<compile_context>
chip_gen: v7x
topology: tpu7x:2x2x1
jax: 0.10.0
libtpu: 0.0.40
codegen_flags: <defaults>
</compile_context>

<pallas_src>
import functools

import jax
import jax.numpy as jnp
from jax.experimental import pallas as pl
from jax.experimental.pallas import tpu as pltpu


def _act(x, name):
    if name == "relu":
        return jnp.maximum(x, 0.0)
    if name == "tanh":
        return jnp.tanh(x)
    raise ValueError(f"unsupported nonlinearity: {name}")


def _round_up(x, m):
    return ((x + m - 1) // m) * m


# ---------------------------------------------------------------------------
# Kernel 1: Hypernet2 + per-row generated matvec + tanh + neighbor_value_mlp
# ---------------------------------------------------------------------------
def _hyper_value_kernel(x_ref, w1_ref, b1_ref, w2_ref, b2_ref, rexp_ref, ssum_ref,
                        v1_ref, c1_ref, v2_ref, c2_ref, ev_ref, *, hidden, act):
    x_f32 = x_ref[...].astype(jnp.float32)                           # (tb, in_dim)
    x_mm = x_f32.astype(w1_ref.dtype)                                # bf16 (or f32) MXU operand

    # Hypernet2: two linear layers + activation (MXU, f32 accumulation).
    h = jnp.dot(x_mm, w1_ref[...], preferred_element_type=jnp.float32) + b1_ref[...]
    h = _act(h, act)
    w_flat = jnp.dot(h.astype(w2_ref.dtype), w2_ref[...],
                     preferred_element_type=jnp.float32) + b2_ref[...]
    w_flat = _act(w_flat, act)                                       # (tb, in_dim*hidden) f32

    # Per-row generated-weight matvec, fully vectorized and f32-exact:
    #   Rexp[i, i*H + o] = 1  ->  x_rep = x @ Rexp replicates each x column over H lanes
    #   Ssum[i*H + o, o] = 1  ->  (x_rep * w_flat) @ Ssum sums the per-i products
    # Both 0/1 matmuls run on the MXU (idle here), no broadcasts/reshapes/unrolled loops.
    x_rep = jnp.dot(x_f32, rexp_ref[...], preferred_element_type=jnp.float32)
    emb = jnp.tanh(jnp.dot(x_rep * w_flat, ssum_ref[...],
                           preferred_element_type=jnp.float32))      # (tb, hidden)

    # neighbor_value_mlp: two linear layers + activation.
    t = jnp.dot(emb.astype(v1_ref.dtype), v1_ref[...],
                preferred_element_type=jnp.float32) + c1_ref[...]
    t = _act(t, act)
    t = jnp.dot(t.astype(v2_ref.dtype), v2_ref[...],
                preferred_element_type=jnp.float32) + c2_ref[...]
    t = _act(t, act)                                                 # (tb, hidden)

    # Merged [emb | vals] output block -> one wider HBM writeback per tile.
    ev_ref[:, :hidden] = emb.astype(ev_ref.dtype)
    ev_ref[:, hidden:] = t.astype(ev_ref.dtype)


# ---------------------------------------------------------------------------
# Kernel 2: attention MLP + per-batch softmax-weighted pooling (fused)
# ---------------------------------------------------------------------------
def _attn_pool_kernel(ev_ref, mt_ref, gsum_ref, a1t_ref, a2_ref, b2_ref, a3_ref, b3_ref,
                      out_ref, *, hidden, act):
    ev = ev_ref[...].astype(jnp.float32)                             # (gb*L, 2*hidden)
    emb = ev[:, :hidden]
    vals = ev[:, hidden:]

    # Split first layer: cat(emb, mean_rep) @ A1 == emb @ A1_top + (mean @ A1_bot + b1),
    # where the second term arrives per-row via mt_ref (built once in the wrapper).
    h = jnp.dot(emb.astype(a1t_ref.dtype), a1t_ref[...],
                preferred_element_type=jnp.float32) + mt_ref[...]
    h = _act(h, act)
    h = jnp.dot(h.astype(a2_ref.dtype), a2_ref[...],
                preferred_element_type=jnp.float32) + b2_ref[...]
    h = _act(h, act)
    logits = jnp.dot(h.astype(a3_ref.dtype), a3_ref[...],
                     preferred_element_type=jnp.float32) + b3_ref[...]   # (gb*L, 1)

    # Per-group (L consecutive rows == one batch element) softmax-weighted pooling,
    # reshape-free:  out[g] = (G @ (e * vals))[g] / (G @ e)[g]  with e = exp(logits - max).
    # Shifting by the global tile max is exact (it is constant within every group).
    z = jnp.exp(logits - jnp.max(logits, axis=(0, 1), keepdims=True))    # (gb*L, 1)
    num = jnp.dot(gsum_ref[...], z * vals, preferred_element_type=jnp.float32)   # (gb, hidden)
    den = jnp.dot(gsum_ref[...], z, preferred_element_type=jnp.float32)          # (gb, 1)
    out_ref[...] = (num / den).astype(out_ref.dtype)


# ---------------------------------------------------------------------------
# Full Actor_ObstacleEncoder forward
# ---------------------------------------------------------------------------
def actor_obstacle_encoder_forward(obs, all_neighbor_obs_size, batch_size, params, *,
                                   self_obs_dim, obstacle_obs_dim, obstacle_hidden_size,
                                   num_landmarks, act="relu",
                                   compute_dtype=jnp.bfloat16, max_tb=512):
    _, T, _ = obs.shape
    hidden = obstacle_hidden_size
    in_dim = self_obs_dim + obstacle_obs_dim
    out_w = in_dim * hidden
    hdim = params["hw1"].shape[1]
    assert params["hw2"].shape[1] == out_w

    # --- slicing / repeat / concat glue (mirrors the PyTorch view()/repeat() ordering) ---
    obs_obstacles = obs[:, :, self_obs_dim + all_neighbor_obs_size:].reshape(-1, obstacle_obs_dim)
    self_rep = jnp.tile(obs[:, :, :self_obs_dim],
                        (1, num_landmarks, 1)).reshape(-1, self_obs_dim)
    mlp_input = jnp.concatenate([self_rep, obs_obstacles], axis=1)       # (N, in_dim)
    N = mlp_input.shape[0]
    B = batch_size
    L = N // B                              # rows per batch element (== num_landmarks here)
    assert B * L == N

    # --- tilings --------------------------------------------------------------------------
    # Kernel 2: grid over batch elements, each tile holds gb whole groups of L rows.
    gb_cap = max(8, max_tb // max(L, 1))
    gb = _round_up(min(gb_cap, max(pl.cdiv(B, 2), 8)), 8)   # >=2 steps when B is large (v7x 2 TCs)
    grid2 = pl.cdiv(B, gb)
    b_pad = grid2 * gb
    n2 = b_pad * L                                          # rows kernel 2 reads

    # Kernel 1: grid over rows, padded once so kernel 2 reads its output directly.
    tb = min(max_tb, _round_up(max(pl.cdiv(n2, 2), 8), 8))  # >=2 steps when there is enough work
    grid1 = pl.cdiv(n2, tb)
    n_pad = grid1 * tb                                      # >= n2 >= N

    x = mlp_input.astype(jnp.float32)
    if n_pad != N:
        # Zero rows -> finite emb/vals; they only ever land in fake batch groups (>= B),
        # whose pooled outputs are sliced off below.  No -inf masking needed.
        x = jnp.pad(x, ((0, n_pad - N), (0, 0)))

    # --- kernel-1 operands ------------------------------------------------------------------
    w1c = params["hw1"].astype(compute_dtype)
    w2c = params["hw2"].astype(compute_dtype)
    v1c = params["vw1"].astype(compute_dtype)
    v2c = params["vw2"].astype(compute_dtype)
    b1r = params["hb1"].reshape(1, hdim).astype(jnp.float32)
    b2r = params["hb2"].reshape(1, out_w).astype(jnp.float32)
    c1r = params["vb1"].reshape(1, hidden).astype(jnp.float32)
    c2r = params["vb2"].reshape(1, hidden).astype(jnp.float32)
    # 0/1 selection matrices for the generated-weight matvec (exact in f32).
    rexp = jnp.kron(jnp.eye(in_dim, dtype=jnp.float32),
                    jnp.ones((1, hidden), jnp.float32))                  # (in_dim, out_w)
    ssum = jnp.kron(jnp.ones((in_dim, 1), jnp.float32),
                    jnp.eye(hidden, dtype=jnp.float32))                  # (out_w, hidden)

    ev_dtype = jnp.bfloat16 if compute_dtype == jnp.bfloat16 else jnp.float32
    const = lambda i: (0, 0)
    nbytes = lambda a: a.size * a.dtype.itemsize

    flops1 = 2 * n_pad * (in_dim * hdim + hdim * out_w + 2 * in_dim * out_w
                          + out_w * hidden + 2 * hidden * hidden)
    cost1 = pl.CostEstimate(
        flops=flops1, transcendentals=n_pad * hidden,
        bytes_accessed=(nbytes(x) + nbytes(w1c) + nbytes(w2c) + nbytes(v1c) + nbytes(v2c)
                        + nbytes(rexp) + nbytes(ssum)
                        + n_pad * 2 * hidden * jnp.dtype(ev_dtype).itemsize))

    # NOTE: at max_tb=512 the per-step working set (~3 MiB) fits every generation's scoped-VMEM
    # default (16 MiB on v5e).  For tb > ~2048 or much larger in_dim*hidden, set
    # pltpu.CompilerParams(vmem_limit_bytes=...), tile W2 along its output dim with a second
    # grid axis, or mark the resident W2/b2 specs pipeline_mode=pl.Buffered(1).
    embvals = pl.pallas_call(
        functools.partial(_hyper_value_kernel, hidden=hidden, act=act),
        out_shape=jax.ShapeDtypeStruct((n_pad, 2 * hidden), ev_dtype),
        grid_spec=pltpu.PrefetchScalarGridSpec(
            num_scalar_prefetch=0,
            grid=(grid1,),
            in_specs=[
                pl.BlockSpec((tb, in_dim), lambda i: (i, 0)),     # mlp_input tile
                pl.BlockSpec((in_dim, hdim), const),              # hyper W1 (resident)
                pl.BlockSpec((1, hdim), const),                   # hyper b1
                pl.BlockSpec((hdim, out_w), const),               # hyper W2 (resident)
                pl.BlockSpec((1, out_w), const),                  # hyper b2
                pl.BlockSpec((in_dim, out_w), const),             # Rexp (resident)
                pl.BlockSpec((out_w, hidden), const),             # Ssum (resident)
                pl.BlockSpec((hidden, hidden), const),            # value V1
                pl.BlockSpec((1, hidden), const),                 # value c1
                pl.BlockSpec((hidden, hidden), const),            # value V2
                pl.BlockSpec((1, hidden), const),                 # value c2
            ],
            out_specs=pl.BlockSpec((tb, 2 * hidden), lambda i: (i, 0)),   # [emb | vals]
        ),
        compiler_params=pltpu.CompilerParams(dimension_semantics=("parallel",)),
        cost_estimate=cost1,
    )(x, w1c, b1r, w2c, b2r, rexp, ssum, v1c, c1r, v2c, c2r)

    # --- glue between kernels: per-batch mean and its attention-layer contribution ----------
    # mean groups rows by r // L;  the attention input pairs row r with mean[r % B]
    # (faithfully reproducing the module's mean.repeat(num_repeat, 1) quirk).
    hi = jax.lax.Precision.HIGHEST
    emb_f32 = embvals[:N, :hidden].astype(jnp.float32)
    mean = emb_f32.reshape(B, L, hidden).mean(axis=1)                     # (B, hidden)
    a1_full = params["aw1"].astype(jnp.float32)
    mean_term = (jnp.dot(mean, a1_full[hidden:], precision=hi)
                 + params["ab1"].reshape(1, hidden).astype(jnp.float32))  # (B, hidden)
    mean_term_rep = jnp.tile(mean_term, (pl.cdiv(n2, B), 1))[:n2]         # row r -> mean_term[r%B]

    # --- kernel-2 operands -------------------------------------------------------------------
    a1t = params["aw1"][:hidden].astype(compute_dtype)
    a2c = params["aw2"].astype(compute_dtype)
    a3c = params["aw3"].astype(compute_dtype)
    ab2r = params["ab2"].reshape(1, hidden).astype(jnp.float32)
    ab3r = params["ab3"].reshape(1, 1).astype(jnp.float32)
    gsum = jnp.kron(jnp.eye(gb, dtype=jnp.float32),
                    jnp.ones((1, L), jnp.float32))                        # (gb, gb*L) group-sum

    flops2 = 2 * n2 * (2 * hidden * hidden + hidden) + 2 * n2 * gb * (hidden + 1)
    cost2 = pl.CostEstimate(
        flops=flops2, transcendentals=n2,
        bytes_accessed=(n2 * 2 * hidden * jnp.dtype(ev_dtype).itemsize
                        + nbytes(mean_term_rep) + nbytes(gsum) + nbytes(a1t) + nbytes(a2c)
                        + nbytes(a3c) + b_pad * hidden * 4))

    pooled = pl.pallas_call(
        functools.partial(_attn_pool_kernel, hidden=hidden, act=act),
        out_shape=jax.ShapeDtypeStruct((b_pad, hidden), jnp.float32),
        grid_spec=pltpu.PrefetchScalarGridSpec(
            num_scalar_prefetch=0,
            grid=(grid2,),
            in_specs=[
                pl.BlockSpec((gb * L, 2 * hidden), lambda i: (i, 0)),  # [emb | vals] tile
                pl.BlockSpec((gb * L, hidden), lambda i: (i, 0)),      # mean-term per row
                pl.BlockSpec((gb, gb * L), const),                     # group-sum matrix
                pl.BlockSpec((hidden, hidden), const),                 # attn A1 (emb half)
                pl.BlockSpec((hidden, hidden), const),                 # attn A2
                pl.BlockSpec((1, hidden), const),                      # attn b2
                pl.BlockSpec((hidden, 1), const),                      # attn A3
                pl.BlockSpec((1, 1), const),                           # attn b3
            ],
            out_specs=pl.BlockSpec((gb, hidden), lambda i: (i, 0)),    # pooled per batch elem
        ),
        compiler_params=pltpu.CompilerParams(dimension_semantics=("parallel",)),
        cost_estimate=cost2,
    )(embvals, mean_term_rep, gsum, a1t, a2c, ab2r, a3c, ab3r)

    return pooled[:B].reshape(-1, T, hidden)


# ---------------------------------------------------------------------------
# Pure-JAX reference (f32, highest matmul precision)
# ---------------------------------------------------------------------------
def actor_obstacle_encoder_reference(obs, all_neighbor_obs_size, batch_size, params, *,
                                     self_obs_dim, obstacle_obs_dim, obstacle_hidden_size,
                                     num_landmarks, act="relu"):
    _, T, _ = obs.shape
    hidden = obstacle_hidden_size
    hi = jax.lax.Precision.HIGHEST
    a = lambda v: _act(v, act)

    obs_obstacles = obs[:, :, self_obs_dim + all_neighbor_obs_size:].reshape(-1, obstacle_obs_dim)
    self_rep = jnp.tile(obs[:, :, :self_obs_dim],
                        (1, num_landmarks, 1)).reshape(-1, self_obs_dim)
    x = jnp.concatenate([self_rep, obs_obstacles], axis=1)
    in_dim = x.shape[1]

    h = a(jnp.dot(x, params["hw1"], precision=hi) + params["hb1"])
    w_flat = a(jnp.dot(h, params["hw2"], precision=hi) + params["hb2"])
    w3 = w_flat.reshape(-1, in_dim, hidden)
    emb = jnp.tanh(jnp.einsum("ni,nio->no", x, w3, precision=hi))
    vals = a(jnp.dot(emb, params["vw1"], precision=hi) + params["vb1"])
    vals = a(jnp.dot(vals, params["vw2"], precision=hi) + params["vb2"])

    mean = emb.reshape(batch_size, -1, hidden).mean(axis=1)
    mean_rep = jnp.tile(mean, (num_landmarks, 1))
    att_in = jnp.concatenate([emb, mean_rep], axis=1)
    t = a(jnp.dot(att_in, params["aw1"], precision=hi) + params["ab1"])
    t = a(jnp.dot(t, params["aw2"], precision=hi) + params["ab2"])
    logits = jnp.dot(t, params["aw3"], precision=hi) + params["ab3"]

    att = jax.nn.softmax(logits.reshape(batch_size, -1), axis=1).reshape(-1, 1)
    final = (att * vals).reshape(batch_size, -1, hidden).sum(axis=1)
    return final.reshape(-1, T, hidden)


if __name__ == "__main__":
    # Small config consistent with the module's forward.
    num_landmarks = 8
    self_obs_dim = 10
    obstacle_obs_dim = 6
    obstacle_hidden_size = 32
    all_neighbor_obs_size = 24
    E, T = 4, 1
    batch_size = E * T
    in_dim = self_obs_dim + obstacle_obs_dim                 # Hypernet2 input / main_input_dim
    hidden = obstacle_hidden_size                            # Hypernet2 hidden / main_output_dim
    obs_dim = self_obs_dim + all_neighbor_obs_size + num_landmarks * obstacle_obs_dim

    key = jax.random.PRNGKey(0)
    ks = jax.random.split(key, 16)
    obs = jax.random.normal(ks[0], (E, T, obs_dim), dtype=jnp.float32)

    def w(k, shape, scale=0.1):
        return scale * jax.random.normal(k, shape, dtype=jnp.float32)

    # Weights stored pre-transposed as (in, out) == PyTorch W^T; spectral norm is an
    # inference-time no-op on the stored weights.
    params = {
        "hw1": w(ks[1], (in_dim, hidden)),   "hb1": w(ks[2], (hidden,)),
        "hw2": w(ks[3], (hidden, in_dim * hidden)), "hb2": w(ks[4], (in_dim * hidden,)),
        "vw1": w(ks[5], (hidden, hidden)),   "vb1": w(ks[6], (hidden,)),
        "vw2": w(ks[7], (hidden, hidden)),   "vb2": w(ks[8], (hidden,)),
        "aw1": w(ks[9], (2 * hidden, hidden)), "ab1": w(ks[10], (hidden,)),
        "aw2": w(ks[11], (hidden, hidden)),  "ab2": w(ks[12], (hidden,)),
        "aw3": w(ks[13], (hidden, 1)),       "ab3": w(ks[14], (1,)),
    }

    kwargs = dict(self_obs_dim=self_obs_dim, obstacle_obs_dim=obstacle_obs_dim,
                  obstacle_hidden_size=obstacle_hidden_size,
                  num_landmarks=num_landmarks, act="relu")

    ref = jax.block_until_ready(
        actor_obstacle_encoder_reference(obs, all_neighbor_obs_size, batch_size, params,
                                         **kwargs))

    # f32 compute path: tight check.
    out_f32 = jax.block_until_ready(
        actor_obstacle_encoder_forward(obs, all_neighbor_obs_size, batch_size, params,
                                       compute_dtype=jnp.float32, **kwargs))
    assert out_f32.shape == (batch_size, T, hidden)
    assert jnp.allclose(out_f32, ref, atol=5e-3, rtol=5e-3), \
        float(jnp.max(jnp.abs(out_f32 - ref)))

    # bf16 matmul operands + bf16 inter-kernel emb/vals (MXU fast path): looser tolerance.
    out_bf16 = jax.block_until_ready(
        actor_obstacle_encoder_forward(obs, all_neighbor_obs_size, batch_size, params,
                                       compute_dtype=jnp.bfloat16, **kwargs))
    assert out_bf16.shape == (batch_size, T, hidden)
    assert jnp.allclose(out_bf16, ref, atol=3e-2, rtol=3e-2), \
        float(jnp.max(jnp.abs(out_bf16 - ref)))

    print("KERNEL_OK")
</pallas_src>

<mosaic_0001>
module attributes {stable_mosaic.version = 11 : i64} {
  func.func @_hyper_value_kernel(%arg0: i32, %arg1: memref<32x16xf32, #tpu.memory_space<vmem>>, %arg2: memref<16x32xf32, #tpu.memory_space<vmem>>, %arg3: memref<1x32xf32, #tpu.memory_space<vmem>>, %arg4: memref<32x512xf32, #tpu.memory_space<vmem>>, %arg5: memref<1x512xf32, #tpu.memory_space<vmem>>, %arg6: memref<16x512xf32, #tpu.memory_space<vmem>>, %arg7: memref<512x32xf32, #tpu.memory_space<vmem>>, %arg8: memref<32x32xf32, #tpu.memory_space<vmem>>, %arg9: memref<1x32xf32, #tpu.memory_space<vmem>>, %arg10: memref<32x32xf32, #tpu.memory_space<vmem>>, %arg11: memref<1x32xf32, #tpu.memory_space<vmem>>, %arg12: memref<32x64xf32, #tpu.memory_space<vmem>>) attributes {dimension_semantics = [#tpu.dimension_semantics<parallel>], iteration_bounds = array<i64: 2>, scalar_prefetch = 0 : i64, scratch_operands = 0 : i64, tpu.core_type = #tpu.core_type<tc>, window_params = [{transform_indices = @transform_0, window_bounds = array<i64: 32, 16>}, {pipeline_mode = #tpu.pipeline_mode<synchronous>, transform_indices = @transform_1, window_bounds = array<i64: 16, 32>}, {pipeline_mode = #tpu.pipeline_mode<synchronous>, transform_indices = @transform_2, window_bounds = array<i64: 1, 32>}, {pipeline_mode = #tpu.pipeline_mode<synchronous>, transform_indices = @transform_3, window_bounds = array<i64: 32, 512>}, {pipeline_mode = #tpu.pipeline_mode<synchronous>, transform_indices = @transform_4, window_bounds = array<i64: 1, 512>}, {pipeline_mode = #tpu.pipeline_mode<synchronous>, transform_indices = @transform_5, window_bounds = array<i64: 16, 512>}, {pipeline_mode = #tpu.pipeline_mode<synchronous>, transform_indices = @transform_6, window_bounds = array<i64: 512, 32>}, {pipeline_mode = #tpu.pipeline_mode<synchronous>, transform_indices = @transform_7, window_bounds = array<i64: 32, 32>}, {pipeline_mode = #tpu.pipeline_mode<synchronous>, transform_indices = @transform_8, window_bounds = array<i64: 1, 32>}, {pipeline_mode = #tpu.pipeline_mode<synchronous>, transform_indices = @transform_9, window_bounds = array<i64: 32, 32>}, {pipeline_mode = #tpu.pipeline_mode<synchronous>, transform_indices = @transform_10, window_bounds = array<i64: 1, 32>}, {transform_indices = @transform_11, window_bounds = array<i64: 32, 64>}]} {
    %c0 = arith.constant 0 : index
    %c0_0 = arith.constant 0 : index
    %0 = vector.load %arg1[%c0, %c0_0] : memref<32x16xf32, #tpu.memory_space<vmem>>, vector<32x16xf32>
    %c0_1 = arith.constant 0 : index
    %c0_2 = arith.constant 0 : index
    %1 = vector.load %arg2[%c0_1, %c0_2] : memref<16x32xf32, #tpu.memory_space<vmem>>, vector<16x32xf32>
    %cst = arith.constant dense<0.000000e+00> : vector<32x32xf32>
    %2 = tpu.matmul %0, %1, %cst {dimension_numbers = #tpu.dot_dimension_numbers<[1], [0], [0], [1], [0, 0, 1, 1], [], []>} : vector<32x16xf32>, vector<16x32xf32>, vector<32x32xf32> -> vector<32x32xf32>
    %c0_3 = arith.constant 0 : index
    %c0_4 = arith.constant 0 : index
    %3 = vector.load %arg3[%c0_3, %c0_4] : memref<1x32xf32, #tpu.memory_space<vmem>>, vector<1x32xf32>
    %4 = vector.broadcast %3 : vector<1x32xf32> to vector<32x32xf32>
    %5 = arith.addf %2, %4 : vector<32x32xf32>
    %cst_5 = arith.constant 0.000000e+00 : f32
    %6 = vector.broadcast %cst_5 : f32 to vector<32x32xf32>
    %7 = arith.maximumf %5, %6 : vector<32x32xf32>
    %c0_6 = arith.constant 0 : index
    %c0_7 = arith.constant 0 : index
    %8 = vector.load %arg4[%c0_6, %c0_7] : memref<32x512xf32, #tpu.memory_space<vmem>>, vector<32x512xf32>
    %cst_8 = arith.constant dense<0.000000e+00> : vector<32x512xf32>
    %9 = tpu.matmul %7, %8, %cst_8 {dimension_numbers = #tpu.dot_dimension_numbers<[1], [0], [0], [1], [0, 0, 1, 1], [], []>} : vector<32x32xf32>, vector<32x512xf32>, vector<32x512xf32> -> vector<32x512xf32>
    %c0_9 = arith.constant 0 : index
    %c0_10 = arith.constant 0 : index
    %10 = vector.load %arg5[%c0_9, %c0_10] : memref<1x512xf32, #tpu.memory_space<vmem>>, vector<1x512xf32>
    %11 = vector.broadcast %10 : vector<1x512xf32> to vector<32x512xf32>
    %12 = arith.addf %9, %11 : vector<32x512xf32>
    %cst_11 = arith.constant 0.000000e+00 : f32
    %13 = vector.broadcast %cst_11 : f32 to vector<32x512xf32>
    %14 = arith.maximumf %12, %13 : vector<32x512xf32>
    %c0_12 = arith.constant 0 : index
    %c0_13 = arith.constant 0 : index
    %15 = vector.load %arg6[%c0_12, %c0_13] : memref<16x512xf32, #tpu.memory_space<vmem>>, vector<16x512xf32>
    %cst_14 = arith.constant dense<0.000000e+00> : vector<32x512xf32>
    %16 = tpu.matmul %0, %15, %cst_14 {dimension_numbers = #tpu.dot_dimension_numbers<[1], [0], [0], [1], [0, 0, 1, 1], [], []>} : vector<32x16xf32>, vector<16x512xf32>, vector<32x512xf32> -> vector<32x512xf32>
    %17 = arith.mulf %16, %14 : vector<32x512xf32>
    %c0_15 = arith.constant 0 : index
    %c0_16 = arith.constant 0 : index
    %18 = vector.load %arg7[%c0_15, %c0_16] : memref<512x32xf32, #tpu.memory_space<vmem>>, vector<512x32xf32>
    %cst_17 = arith.constant dense<0.000000e+00> : vector<32x32xf32>
    %19 = tpu.matmul %17, %18, %cst_17 {dimension_numbers = #tpu.dot_dimension_numbers<[1], [0], [0], [1], [0, 0, 1, 1], [], []>} : vector<32x512xf32>, vector<512x32xf32>, vector<32x32xf32> -> vector<32x32xf32>
    %20 = math.tanh %19 : vector<32x32xf32>
    %c0_18 = arith.constant 0 : index
    %c0_19 = arith.constant 0 : index
    %21 = vector.load %arg8[%c0_18, %c0_19] : memref<32x32xf32, #tpu.memory_space<vmem>>, vector<32x32xf32>
    %cst_20 = arith.constant dense<0.000000e+00> : vector<32x32xf32>
    %22 = tpu.matmul %20, %21, %cst_20 {dimension_numbers = #tpu.dot_dimension_numbers<[1], [0], [0], [1], [0, 0, 1, 1], [], []>} : vector<32x32xf32>, vector<32x32xf32>, vector<32x32xf32> -> vector<32x32xf32>
    %c0_21 = arith.constant 0 : index
    %c0_22 = arith.constant 0 : index
    %23 = vector.load %arg9[%c0_21, %c0_22] : memref<1x32xf32, #tpu.memory_space<vmem>>, vector<1x32xf32>
    %24 = vector.broadcast %23 : vector<1x32xf32> to vector<32x32xf32>
    %25 = arith.addf %22, %24 : vector<32x32xf32>
    %cst_23 = arith.constant 0.000000e+00 : f32
    %26 = vector.broadcast %cst_23 : f32 to vector<32x32xf32>
    %27 = arith.maximumf %25, %26 : vector<32x32xf32>
    %c0_24 = arith.constant 0 : index
    %c0_25 = arith.constant 0 : index
    %28 = vector.load %arg10[%c0_24, %c0_25] : memref<32x32xf32, #tpu.memory_space<vmem>>, vector<32x32xf32>
    %cst_26 = arith.constant dense<0.000000e+00> : vector<32x32xf32>
    %29 = tpu.matmul %27, %28, %cst_26 {dimension_numbers = #tpu.dot_dimension_numbers<[1], [0], [0], [1], [0, 0, 1, 1], [], []>} : vector<32x32xf32>, vector<32x32xf32>, vector<32x32xf32> -> vector<32x32xf32>
    %c0_27 = arith.constant 0 : index
    %c0_28 = arith.constant 0 : index
    %30 = vector.load %arg11[%c0_27, %c0_28] : memref<1x32xf32, #tpu.memory_space<vmem>>, vector<1x32xf32>
    %31 = vector.broadcast %30 : vector<1x32xf32> to vector<32x32xf32>
    %32 = arith.addf %29, %31 : vector<32x32xf32>
    %cst_29 = arith.constant 0.000000e+00 : f32
    %33 = vector.broadcast %cst_29 : f32 to vector<32x32xf32>
    %34 = arith.maximumf %32, %33 : vector<32x32xf32>
    %c0_30 = arith.constant 0 : index
    %c0_31 = arith.constant 0 : index
    %35 = vector.load %arg12[%c0_30, %c0_31] : memref<32x64xf32, #tpu.memory_space<vmem>>, vector<32x32xf32>
    tpu.vector_store %arg12[%c0_30, %c0_31], %20 {strides = array<i32>} : memref<32x64xf32, #tpu.memory_space<vmem>>, vector<32x32xf32>,
    %c0_32 = arith.constant 0 : index
    %c32 = arith.constant 32 : index
    %36 = vector.load %arg12[%c0_32, %c32] : memref<32x64xf32, #tpu.memory_space<vmem>>, vector<32x32xf32>
    tpu.vector_store %arg12[%c0_32, %c32], %34 {strides = array<i32>} : memref<32x64xf32, #tpu.memory_space<vmem>>, vector<32x32xf32>,
    return
  }
  func.func @transform_0(%arg0: i32) -> (i32, i32) {
    %c0_i32 = arith.constant 0 : i32
    %c0_i32_0 = arith.constant 0 : i32
    return %arg0, %c0_i32 : i32, i32
  }
  func.func @transform_1(%arg0: i32) -> (i32, i32) {
    %c0_i32 = arith.constant 0 : i32
    %c0_i32_0 = arith.constant 0 : i32
    %c0_i32_1 = arith.constant 0 : i32
    return %c0_i32, %c0_i32_0 : i32, i32
  }
  func.func @transform_2(%arg0: i32) -> (i32, i32) {
    %c0_i32 = arith.constant 0 : i32
    %c0_i32_0 = arith.constant 0 : i32
    %c0_i32_1 = arith.constant 0 : i32
    return %c0_i32, %c0_i32_0 : i32, i32
  }
  func.func @transform_3(%arg0: i32) -> (i32, i32) {
    %c0_i32 = arith.constant 0 : i32
    %c0_i32_0 = arith.constant 0 : i32
    %c0_i32_1 = arith.constant 0 : i32
    return %c0_i32, %c0_i32_0 : i32, i32
  }
  func.func @transform_4(%arg0: i32) -> (i32, i32) {
    %c0_i32 = arith.constant 0 : i32
    %c0_i32_0 = arith.constant 0 : i32
    %c0_i32_1 = arith.constant 0 : i32
    return %c0_i32, %c0_i32_0 : i32, i32
  }
  func.func @transform_5(%arg0: i32) -> (i32, i32) {
    %c0_i32 = arith.constant 0 : i32
    %c0_i32_0 = arith.constant 0 : i32
    %c0_i32_1 = arith.constant 0 : i32
    return %c0_i32, %c0_i32_0 : i32, i32
  }
  func.func @transform_6(%arg0: i32) -> (i32, i32) {
    %c0_i32 = arith.constant 0 : i32
    %c0_i32_0 = arith.constant 0 : i32
    %c0_i32_1 = arith.constant 0 : i32
    return %c0_i32, %c0_i32_0 : i32, i32
  }
  func.func @transform_7(%arg0: i32) -> (i32, i32) {
    %c0_i32 = arith.constant 0 : i32
    %c0_i32_0 = arith.constant 0 : i32
    %c0_i32_1 = arith.constant 0 : i32
    return %c0_i32, %c0_i32_0 : i32, i32
  }
  func.func @transform_8(%arg0: i32) -> (i32, i32) {
    %c0_i32 = arith.constant 0 : i32
    %c0_i32_0 = arith.constant 0 : i32
    %c0_i32_1 = arith.constant 0 : i32
    return %c0_i32, %c0_i32_0 : i32, i32
  }
  func.func @transform_9(%arg0: i32) -> (i32, i32) {
    %c0_i32 = arith.constant 0 : i32
    %c0_i32_0 = arith.constant 0 : i32
    %c0_i32_1 = arith.constant 0 : i32
    return %c0_i32, %c0_i32_0 : i32, i32
  }
  func.func @transform_10(%arg0: i32) -> (i32, i32) {
    %c0_i32 = arith.constant 0 : i32
    %c0_i32_0 = arith.constant 0 : i32
    %c0_i32_1 = arith.constant 0 : i32
    return %c0_i32, %c0_i32_0 : i32, i32
  }
  func.func @transform_11(%arg0: i32) -> (i32, i32) {
    %c0_i32 = arith.constant 0 : i32
    %c0_i32_0 = arith.constant 0 : i32
    return %arg0, %c0_i32 : i32, i32
  }
}

</mosaic_0001>

<bundles_post_ra>
// kernel: tpu_custom_call.1
= control target key start
LH: loop header
LB: loop body
LE: loop exit
PB: predicated region body
PF: predicated region fallthrough
CT: control target
= control target key end

     0   :  { %16 = vsyncpa [#allocation3], 0  ;;  %s2484_s0 = inlined_call_operand.vmem [shape: f32[64,16], index: 0, kind: input, shape index: {}]   ;;  %s2485_s1 = inlined_call_operand.vmem [shape: f32[16,32], index: 1, kind: input, shape index: {}]   ;;  %s2486_s2 = inlined_call_operand.vmem [shape: f32[1,32], index: 2, kind: input, shape index: {}]   ;;  %s2487_s3 = inlined_call_operand.vmem [shape: f32[32,512], index: 3, kind: input, shape index: {}]   ;;  %s2488_s4 = inlined_call_operand.vmem [shape: f32[1,512], index: 4, kind: input, shape index: {}]   ;;  %s2489_s5 = inlined_call_operand.vmem [shape: f32[16,512], index: 5, kind: input, shape index: {}]   ;;  %s2490_s6 = inlined_call_operand.vmem [shape: f32[512,32], index: 6, kind: input, shape index: {}]   ;;  %s2491_s7 = inlined_call_operand.vmem [shape: f32[32,32], index: 7, kind: input, shape index: {}]   ;;  %s2492_s8 = inlined_call_operand.vmem [shape: f32[1,32], index: 8, kind: input, shape index: {}]   ;;  %s2493_s9 = inlined_call_operand.vmem [shape: f32[32,32], index: 9, kind: input, shape index: {}]   ;;  %s2494_s10 = inlined_call_operand.vmem [shape: f32[1,32], index: 10, kind: input, shape index: {}]   ;;  %s2495_s11 = inlined_call_operand.hbm [shape: f32[64,64], index: 11, kind: output, shape index: {}]  }
   0x1   :  { %18 = vsyncpa [#allocation3 + $0x1], 0  ;;  %s1993_s17 = smov 0   ;;  %s1995_s18 = smov 0  }
   0x2   :  { %s1997_s19 = smov 0   ;;  %s1999_s20 = smov 0  }
   0x3 LB: > { %s2014_s21 = sadd.s32 4294967295, %s1926_s20   ;;  %s1513_s22 = sadd.s32 4294967294, %s1926_s20   ;;  %s1926_s20 = sphi %s1999_s20, %s2503_s20   ;;  %s1922_s19 = sphi %s1997_s19, %s2502_s19   ;;  %s1918_s18 = sphi %s1995_s18, %s2501_s18   ;;  %s1914_s17 = sphi %s1993_s17, %s2500_s17  }
   0x4   : > { %s2018_s23 = sadd.s32 1, %s1926_s20   ;;  %s267_s24 = sadd.s32 1, %s1922_s19 }
   0x5   : > { %s264_s25 = ssub.s32 %s1926_s20, %s2018_s23  ;;  %p277_p0 = scmp.ne.s32.totalorder %s1922_s19, %s1918_s18 }
   0x6   : > { %p265_p1 = scmp.eq.s32.totalorder %s264_s25, 0  ;;  %p278_p2 = scmp.eq.s32.totalorder %s2014_s21, 1 }
   0x7   : > { %p283_p3 = scmp.ne.s32.totalorder %s1918_s18, %s1914_s17  ;;  %p284_p4 = scmp.eq.s32.totalorder %s1513_s22, 1 }
   0x8   : > { %s2029_s26 = scalar_select %p265_p1, %s1922_s19, %s267_s24  }
   0x9   : > { %p2031_p5 = por %p278_p2, %p277_p0  ;;  %p2035_p6 = por %p284_p4, %p283_p3 }
   0xa   : > { %2496 = sst [smem:[#allocation5_spill]] %s2029_s26  ;;  %p1516_p7 = scmp.ge.s32.totalorder %s1926_s20, 1 }
   0xb   : > { %p341_p8 = scmp.lt.s32.totalorder %s1926_s20, 3 }
   0xd   : > { %p342_p9 = pnand %p1516_p7, %p341_p8 }
   0xe   : > { %v392_v0 = vld [vmem:[%s2485_s1] sm:$0xff] (!%p342_p9)  ;;  %v393_v1 = vld [vmem:[%s2485_s1 + $0x8] sm:$0xff] (!%p342_p9)  ;;  %s1518_s14 = sshll.u32 (!%p342_p9), %s2014_s21, 2  ;;  %v506_v5 = vld [vmem:[%s2487_s3 + $0x18] sm:$0xff] (!%p342_p9)  ;;  %vm401_vm0 = vcmask (!%p342_p9), 130048   ;;  %v1928_v34 = vmov (!%p342_p9), 0.0  }
   0xf   : > { %345 = sbr.rel (%p342_p9) target bundleno = 1285 (0x505), region = 64  ;;  %v504_v2 = vld [vmem:[%s2487_s3 + $0x8] sm:$0xff] (!%p342_p9)  ;;  %v1705_v3 = vpack.c.bf16 (!%p342_p9), %v393_v1, %v392_v0  ;;  %p382_p10 = scmp.lt.s32.totalorder (!%p342_p9), %s1518_s14, 7  ;;  %v510_v6 = vld [vmem:[%s2487_s3 + $0x38] sm:$0xff] (!%p342_p9)  ;;  %v503_v9 = vld [vmem:[%s2487_s3] sm:$0xff] (!%p342_p9)  ;;  %618 = vmatprep.mubr.f32.mxu1 (!%p342_p9), %v1928_v34  ;;  %vm541_vm1 = vcmask (!%p342_p9), 261120  }
  0x10   : > { %v508_v4 = vld [vmem:[%s2487_s3 + $0x28] sm:$0xff] (!%p342_p9)  ;;  %v1717_v8 = vpack.c.bf16 (!%p342_p9), %v510_v6, %v506_v5  ;;  %v507_v10 = vld [vmem:[%s2487_s3 + $0x20] sm:$0xff] (!%p342_p9)  ;;  %v505_v12 = vld [vmem:[%s2487_s3 + $0x10] sm:$0xff] (!%p342_p9)  ;;  %vm1432_vm2 = vcmask (!%p342_p9), 523520   ;;  %s1556_s22 = sshll.u32 (!%p342_p9), %s2014_s21, 9  ;;  %s1930_s21 = smov (!%p342_p9), [#allocation2]  }
  0x11   : > { %v1709_v7 = vpack.c.bf16 (!%p342_p9), %v508_v4, %v504_v2  ;;  %1706 = vmatprep.subr.bf16.mxu0 (!%p342_p9), %v1705_v3  ;;  %v1711_v11 = vpack.c.bf16 (!%p342_p9), %v507_v10, %v503_v9  ;;  %v509_v13 = vld [vmem:[%s2487_s3 + $0x30] sm:$0xff] (!%p342_p9)  ;;  %v512_v19 = vld [vmem:[%s2487_s3 + $0x48] sm:$0xff] (!%p342_p9)  ;;  %v514_v21 = vld [vmem:[%s2487_s3 + $0x58] sm:$0xff] (!%p342_p9) }
  0x12   : > { %1708 = vmatpush3.bf16.msra.mxu0 (!%p342_p9), %v1705_v3  ;;  %v1719_v14 = vpack.c.bf16 (!%p342_p9), %v509_v13, %v505_v12  ;;  %v516_v20 = vld [vmem:[%s2487_s3 + $0x68] sm:$0xff] (!%p342_p9)  ;;  %v518_v23 = vld [vmem:[%s2487_s3 + $0x78] sm:$0xff] (!%p342_p9)  ;;  %v511_v24 = vld [vmem:[%s2487_s3 + $0x40] sm:$0xff] (!%p342_p9) }
  0x13   : > { %1710 = vmatprep.subr.bf16.mxu1 (!%p342_p9), %v1709_v7  ;;  %1718 = vmatprep.subr.bf16.mxu0 (!%p342_p9), %v1717_v8  ;;  %v1713_v22 = vpack.c.bf16 (!%p342_p9), %v516_v20, %v512_v19  ;;  %v1721_v25 = vpack.c.bf16 (!%p342_p9), %v518_v23, %v514_v21  ;;  %v515_v26 = vld [vmem:[%s2487_s3 + $0x60] sm:$0xff] (!%p342_p9)  ;;  %v513_v27 = vld [vmem:[%s2487_s3 + $0x50] sm:$0xff] (!%p342_p9)  ;;  %v749_v31 = vld [vmem:[%s2489_s5 + $0x8] sm:$0xff] (!%p342_p9) }
  0x14   : > { %1712 = vmatpush1.bf16.msra.mxu1 (!%p342_p9), %v1711_v11  ;;  %v517_v28 = vld [vmem:[%s2487_s3 + $0x70] sm:$0xff] (!%p342_p9)  ;;  %v1715_v29 = vpack.c.bf16 (!%p342_p9), %v515_v26, %v511_v24  ;;  %v753_v32 = vld [vmem:[%s2489_s5 + $0x28] sm:$0xff] (!%p342_p9)  ;;  %v751_v33 = vld [vmem:[%s2489_s5 + $0x18] sm:$0xff] (!%p342_p9) }
  0x15   : > { %1714 = vmatprep.subr.bf16.mxu1 (!%p342_p9), %v1713_v22  ;;  %v1723_v30 = vpack.c.bf16 (!%p342_p9), %v517_v28, %v513_v27  ;;  %v1725_v35 = vpack.c.bf16 (!%p342_p9), %v753_v32, %v749_v31  ;;  %v755_v36 = vld [vmem:[%s2489_s5 + $0x38] sm:$0xff] (!%p342_p9)  ;;  %v1520_v38 = vld [vmem:[%s2486_s2] ss:$0 sm:$0xff] (!%p342_p9)  ;;  %v750_v42 = vld [vmem:[%s2489_s5 + $0x10] sm:$0xff] (!%p342_p9) }
  0x16   : > { %s2505_s14 = smov (!%p382_p10, %s1518_s14), 7  ;;  %v1729_v37 = vpack.c.bf16 %v755_v36, %v751_v33  ;;  %v748_v39 = vld [vmem:[%s2489_s5] sm:$0xff]  ;;  %v754_v43 = vld [vmem:[%s2489_s5 + $0x30] sm:$0xff]  ;;  %v967_v47 = vld [vmem:[%s2490_s6 + $0x88] sm:$0xff] }
  0x17   : > { %s1519_s29 = sshll.u32 %s2505_s14, 3  ;;  %v752_v41 = vld [vmem:[%s2489_s5 + $0x20] sm:$0xff]  ;;  %v999_v49 = vld [vmem:[%s2490_s6 + $0x188] sm:$0xff]  ;;  %v1731_v51 = vpack.c.bf16 %v754_v43, %v750_v42  ;;  %v968_v3 = vld [vmem:[%s2490_s6 + $0x90] sm:$0xff]  ;;  %s378_s14 = sand.u32 1, %s1918_s18  }
  0x18   : > { %s385_s13 = scalar_lea.vmem %s2484_s0, %s1519_s29  ;;  %1716 = vmatpush1.bf16.msra.mxu1 %v1715_v29  ;;  %v966_v45 = vld [vmem:[%s2490_s6 + $0x80] sm:$0xff]  ;;  %v1727_v50 = vpack.c.bf16 %v752_v41, %v748_v39  ;;  %v951_v0 = vld [vmem:[%s2490_s6 + $0x8] sm:$0xff]  ;;  %v969_v4 = vld [vmem:[%s2490_s6 + $0x98] sm:$0xff]  ;;  %s1517_s15 = sshll.u32 %s378_s14, 5 }
  0x19   : > { %v2075_v15 = vld [vmem:[%s385_s13] sm:$0xff]  ;;  %v2077_v16 = vld [vmem:[%s385_s13 + $0x8] sm:$0xff]  ;;  %v2079_v17 = vld [vmem:[%s385_s13 + $0x10] sm:$0xff]  ;;  %1726 = vmatprep.subr.bf16.mxu1 %v1725_v35  ;;  %v1733_v56 = vpack.c.bf16 %v967_v47, %v966_v45  ;;  %v1737_v11 = vpack.c.bf16 %v969_v4, %v968_v3  ;;  %s2399_s16 = scalar_lea.vmem [#allocation2], %s1517_s15  ;;  %s1929_s15 = smov 32  }
  0x1a   : > { %1671 = vmatprep.mubr.msk.f32.mxu0 %vm401_vm0, %v2075_v15  ;;  %v2087_v18 = vld [vmem:[%s385_s13 + $0x18] sm:$0xff]  ;;  %v998_v48 = vld [vmem:[%s2490_s6 + $0x180] sm:$0xff]  ;;  %v983_v2 = vld [vmem:[%s2490_s6 + $0x108] sm:$0xff]  ;;  %s1451_s26 = sshll.u32 %s2399_s16, 4  ;;  %s2436_s29 = scalar_lea.hbm %s2495_s11, %s1556_s22  ;;  %s2438_s26 = int_to_ptr.vmem [resolvable:$true] %s1451_s26 }
  0x1b   : > { %1672 = vmatmul.mubr.msk.f32.vlgmr.msra.gmra.mrb[0].mxu0 %vm401_vm0, %v2077_v16  ;;  %v1765_v57 = vpack.c.bf16 %v999_v49, %v998_v48  ;;  %v950_v63 = vld [vmem:[%s2490_s6] sm:$0xff]  ;;  %v1000_v5 = vld [vmem:[%s2490_s6 + $0x190] sm:$0xff]  ;;  %v1001_v6 = vld [vmem:[%s2490_s6 + $0x198] sm:$0xff]  ;;  %s2443_s30 = scalar_lea.sflag [#allocation3], %s378_s14  ;;  %s1864_s12 = scalar_lea.vmem %s2438_s26, 512 }
  0x1c   : > { %1674 = vmatprep.mubr.msk.f32.mxu0 %vm401_vm0, %v2079_v17  ;;  %1720 = vmatpush1.bf16.msra.mxu0 %v1719_v14  ;;  %v982_v1 = vld [vmem:[%s2490_s6 + $0x100] sm:$0xff]  ;;  %v1735_v7 = vpack.c.bf16 %v951_v0, %v950_v63  ;;  %v952_v9 = vld [vmem:[%s2490_s6 + $0x10] sm:$0xff]  ;;  %v953_v10 = vld [vmem:[%s2490_s6 + $0x18] sm:$0xff]  ;;  %v1769_v12 = vpack.c.bf16 %v1001_v6, %v1000_v5  ;;  %p1865_p11 = scmp.ne.s32.totalorder %s2438_s26, %s1864_s12  ;;  %s1868_s13 = sshll.u32 %s1930_s21, 4  ;;  %s1869_s13 = int_to_ptr.vmem [resolvable:$false] %s1868_s13 }
  0x1d   : > { %1722 = vmatprep.subr.bf16.mxu0 %v1721_v25  ;;  %v1767_v8 = vpack.c.bf16 %v983_v2, %v982_v1  ;;  %v984_v13 = vld [vmem:[%s2490_s6 + $0x110] sm:$0xff]  ;;  %v985_v14 = vld [vmem:[%s2490_s6 + $0x118] sm:$0xff]  ;;  %v970_v19 = vld [vmem:[%s2490_s6 + $0xa0] sm:$0xff]  ;;  %v1739_v23 = vpack.c.bf16 %v953_v10, %v952_v9  ;;  %p1871_p0 = scmp.lt.s32.totalorder %s2438_s26, %s1869_s13 }
  0x1e   : > { %v971_v20 = vld [vmem:[%s2490_s6 + $0xa8] sm:$0xff]  ;;  %v1002_v21 = vld [vmem:[%s2490_s6 + $0x1a0] sm:$0xff]  ;;  %v1004_v32 = vld [vmem:[%s2490_s6 + $0x1b0] sm:$0xff]  ;;  %p1866_p12 = pnand %p1865_p11, %p2031_p5 }
  0x1f   : > { %1675 = vmatmul.mubr.msk.f32.gmra.mrb[2].mxu0 %vm401_vm0, %v2087_v18  ;;  %v1003_v22 = vld [vmem:[%s2490_s6 + $0x1a8] sm:$0xff]  ;;  %v954_v24 = vld [vmem:[%s2490_s6 + $0x20] sm:$0xff]  ;;  %v1741_v25 = vpack.c.bf16 %v971_v20, %v970_v19  ;;  %v957_v35 = vld [vmem:[%s2490_s6 + $0x38] sm:$0xff] }
  0x20   : > { %1724 = vmatpush1.bf16.msra.mxu0 %v1723_v30  ;;  %707 = vmatprep.mubr.f32.mxu0 %v1928_v34  ;;  %v1773_v26 = vpack.c.bf16 %v1003_v22, %v1002_v21  ;;  %v955_v27 = vld [vmem:[%s2490_s6 + $0x28] sm:$0xff]  ;;  %v986_v28 = vld [vmem:[%s2490_s6 + $0x120] sm:$0xff]  ;;  %v989_v39 = vld [vmem:[%s2490_s6 + $0x138] sm:$0xff]  ;;  %p1867_p13 = pneg %p1866_p12 }
  0x21   : > { %1730 = vmatprep.subr.bf16.mxu0 %v1729_v37  ;;  %v987_v29 = vld [vmem:[%s2490_s6 + $0x128] sm:$0xff]  ;;  %v1743_v30 = vpack.c.bf16 %v955_v27, %v954_v24  ;;  %v974_v41 = vld [vmem:[%s2490_s6 + $0xc0] sm:$0xff]  ;;  %v993_v63 = vld [vmem:[%s2490_s6 + $0x158] sm:$0xff] }
  0x22   : > { %v1775_v31 = vpack.c.bf16 %v987_v29, %v986_v28  ;;  %v975_v42 = vld [vmem:[%s2490_s6 + $0xc8] sm:$0xff]  ;;  %v1006_v43 = vld [vmem:[%s2490_s6 + $0x1c0] sm:$0xff]  ;;  %v1012_v19 = vld [vmem:[%s2490_s6 + $0x1f0] sm:$0xff]  ;;  %v521_v28 = vlaneseq }
  0x23   : > { %v1007_v45 = vld [vmem:[%s2490_s6 + $0x1c8] sm:$0xff]  ;;  %v978_v1 = vld [vmem:[%s2490_s6 + $0xe0] sm:$0xff]  ;;  %v1013_v21 = vld [vmem:[%s2490_s6 + $0x1f8] sm:$0xff] }
  0x24   : > { %v959_v47 = vld [vmem:[%s2490_s6 + $0x48] sm:$0xff]  ;;  %v1781_v48 = vpack.c.bf16 %v1007_v45, %v1006_v43  ;;  %v1010_v3 = vld [vmem:[%s2490_s6 + $0x1e0] sm:$0xff]  ;;  %v964_v22 = vld [vmem:[%s2490_s6 + $0x70] sm:$0xff]  ;;  %v522_v29 = vshrl.u32 %v521_v28, 7 }
  0x25   : > { %v979_v2 = vld [vmem:[%s2490_s6 + $0xe8] sm:$0xff]  ;;  %v962_v6 = vld [vmem:[%s2490_s6 + $0x60] sm:$0xff] }
  0x26   : > { %v1757_v4 = vpack.c.bf16 %v979_v2, %v978_v1  ;;  %v1011_v5 = vld [vmem:[%s2490_s6 + $0x1e8] sm:$0xff]  ;;  %v994_v10 = vld [vmem:[%s2490_s6 + $0x160] sm:$0xff] }
  0xee   : > { %v1673_v40 = vpop.f32.mrb[0].mxu0 }
  0xef   : > { %v480_v44 = vpop.f32.mrb[1].mxu0  ;;  %v486_v52 = vadd.f32 %v1673_v40, %v1520_v38 }
  0xf0   : > { %v481_v46 = vadd.f32 %v1520_v38, %v480_v44  ;;  %v1749_v44 = vpack.c.bf16 %v975_v42, %v974_v41 }
  0xf1   : > { %v500_v59 = vmax.f32 %v486_v52, 0.0 }
  0xf2   : > { %v499_v53 = vmax.f32 %v481_v46, 0.0  ;;  %v1676_v54 = vpop.f32.mrb[2].mxu0  ;;  %v958_v46 = vld [vmem:[%s2490_s6 + $0x40] sm:$0xff] }
  0xf3   : > { %v490_v55 = vpop.f32.mrb[3].mxu0  ;;  %v496_v61 = vadd.f32 %v1676_v54, %v1520_v38  ;;  %v1751_v49 = vpack.c.bf16 %v959_v47, %v958_v46  ;;  %v977_v54 = vld [vmem:[%s2490_s6 + $0xd8] sm:$0xff] }
  0xf4   : > { %1525 = vmatmul.mubr.msk.f32.vlgmr.msra.gmra.mrb[0].mxu1 %vm541_vm1, %v499_v53  ;;  %1529 = vmatmul.mubr.msk.f32.vlgmr.msra.gmra.mrb[4].mxu0 %vm541_vm1, %v499_v53  ;;  %v491_v58 = vadd.f32 %v1520_v38, %v490_v55  ;;  %v988_v38 = vld [vmem:[%s2490_s6 + $0x130] sm:$0xff] }
  0xf5   : > { %1728 = vmatpush1.bf16.msra.mxu1 %v1727_v50  ;;  %1732 = vmatpush1.bf16.msra.mxu0 %v1731_v51  ;;  %v502_v62 = vmax.f32 %v496_v61, 0.0  ;;  %v1779_v40 = vpack.c.bf16 %v989_v39, %v988_v38  ;;  %v990_v50 = vld [vmem:[%s2490_s6 + $0x140] sm:$0xff]  ;;  %v991_v51 = vld [vmem:[%s2490_s6 + $0x148] sm:$0xff]  ;;  %v976_v53 = vld [vmem:[%s2490_s6 + $0xd0] sm:$0xff] }
  0xf6   : > { %624 = vmatprep.mubr.f32.mxu1 %v1928_v34  ;;  %713 = vmatprep.mubr.f32.mxu0 %v1928_v34  ;;  %v501_v60 = vmax.f32 %v491_v58, 0.0  ;;  %v1783_v52 = vpack.c.bf16 %v991_v51, %v990_v50  ;;  %v1008_v55 = vld [vmem:[%s2490_s6 + $0x1d0] sm:$0xff] }
  0xf7   : > { %1734 = vmatprep.subr.bf16.mxu1 %v1733_v56  ;;  %1766 = vmatprep.subr.bf16.mxu0 %v1765_v57  ;;  %v1753_v56 = vpack.c.bf16 %v977_v54, %v976_v53  ;;  %v1009_v57 = vld [vmem:[%s2490_s6 + $0x1d8] sm:$0xff]  ;;  %v960_v58 = vld [vmem:[%s2490_s6 + $0x50] sm:$0xff] }
  0xf8   : > { %1526 = vmatmul.mubr.msk.f32.gmra.mrb[2].mxu1 %vm541_vm1, %v500_v59  ;;  %1530 = vmatmul.mubr.msk.f32.gmra.mrb[6].mxu0 %vm541_vm1, %v500_v59  ;;  %v961_v59 = vld [vmem:[%s2490_s6 + $0x58] sm:$0xff] }
  0xf9   : > { %630 = vmatprep.mubr.f32.mxu1 %v1928_v34  ;;  %719 = vmatprep.mubr.f32.mxu0 %v1928_v34  ;;  %v1755_v61 = vpack.c.bf16 %v961_v59, %v960_v58 }
  0xfc   : > { %1527 = vmatmul.mubr.msk.f32.gmra.mrb[4].mxu1 %vm541_vm1, %v501_v60  ;;  %1531 = vmatmul.mubr.msk.f32.gmra.mrb[8].mxu0 %vm541_vm1, %v501_v60  ;;  %v1785_v60 = vpack.c.bf16 %v1009_v57, %v1008_v55 }
  0xfd   : > { %636 = vmatprep.mubr.f32.mxu1 %v1928_v34  ;;  %725 = vmatprep.mubr.f32.mxu0 %v1928_v34 }
 0x100   : > { %1528 = vmatmul.mubr.msk.f32.gmra.mrb[6].mxu1 %vm541_vm1, %v502_v62  ;;  %1532 = vmatmul.mubr.msk.f32.gmra.mrb[10].mxu0 %vm541_vm1, %v502_v62  ;;  %v992_v62 = vld [vmem:[%s2490_s6 + $0x150] sm:$0xff] }
 0x101   : > { %820 = vmatprep.mubr.f32.mxu1 %v1928_v34  ;;  %909 = vmatprep.mubr.f32.mxu0 %v1928_v34  ;;  %v1787_v0 = vpack.c.bf16 %v993_v63, %v992_v62 }
 0x104   : > { %1533 = vmatmul.mubr.msk.f32.vlgmr.msra.gmra.mrb[8].mxu1 %vm401_vm0, %v2075_v15  ;;  %1537 = vmatmul.mubr.msk.f32.vlgmr.msra.gmra.mrb[12].mxu0 %vm401_vm0, %v2075_v15  ;;  %v1771_v15 = vpack.c.bf16 %v985_v14, %v984_v13  ;;  %v980_v13 = vld [vmem:[%s2490_s6 + $0xf0] sm:$0xff]  ;;  %v981_v14 = vld [vmem:[%s2490_s6 + $0xf8] sm:$0xff] }
 0x105   : > { %826 = vmatprep.mubr.f32.mxu1 %v1928_v34  ;;  %915 = vmatprep.mubr.f32.mxu0 %v1928_v34  ;;  %v1761_v20 = vpack.c.bf16 %v981_v14, %v980_v13 }
 0x106   : > { %1736 = vmatpush3.bf16.msra.mxu1 %v1735_v7  ;;  %1768 = vmatpush3.bf16.msra.mxu0 %v1767_v8  ;;  %v963_v7 = vld [vmem:[%s2490_s6 + $0x68] sm:$0xff]  ;;  %v1789_v8 = vpack.c.bf16 %v1011_v5, %v1010_v3 }
 0x107   : > { %1738 = vmatprep.subr.bf16.mxu1 %v1737_v11  ;;  %1770 = vmatprep.subr.bf16.mxu0 %v1769_v12  ;;  %v1759_v9 = vpack.c.bf16 %v963_v7, %v962_v6  ;;  %v995_v11 = vld [vmem:[%s2490_s6 + $0x168] sm:$0xff] }
 0x108   : > { %1534 = vmatmul.mubr.msk.f32.gmra.mrb[10].mxu1 %vm401_vm0, %v2077_v16  ;;  %1538 = vmatmul.mubr.msk.f32.gmra.mrb[14].mxu0 %vm401_vm0, %v2077_v16  ;;  %v972_v16 = vld [vmem:[%s2490_s6 + $0xb0] sm:$0xff]  ;;  %v1791_v12 = vpack.c.bf16 %v995_v11, %v994_v10 }
 0x109   : > { %832 = vmatprep.mubr.f32.mxu1 %v1928_v34  ;;  %921 = vmatprep.mubr.f32.mxu0 %v1928_v34 }
 0x10a   : > { %1740 = vmatpush3.bf16.msra.mxu1 %v1739_v23  ;;  %1772 = vmatpush3.bf16.msra.mxu0 %v1771_v15  ;;  %v965_v23 = vld [vmem:[%s2490_s6 + $0x78] sm:$0xff]  ;;  %v1793_v15 = vpack.c.bf16 %v1013_v21, %v1012_v19 }
 0x10b   : > { %1742 = vmatprep.subr.bf16.mxu1 %v1741_v25  ;;  %1774 = vmatprep.subr.bf16.mxu0 %v1773_v26  ;;  %v1763_v24 = vpack.c.bf16 %v965_v23, %v964_v22  ;;  %v996_v25 = vld [vmem:[%s2490_s6 + $0x170] sm:$0xff]  ;;  %v997_v26 = vld [vmem:[%s2490_s6 + $0x178] sm:$0xff] }
 0x10c   : > { %1535 = vmatmul.mubr.msk.f32.gmra.mrb[12].mxu1 %vm401_vm0, %v2079_v17  ;;  %1539 = vmatmul.mubr.msk.f32.gmra.mrb[16].mxu0 %vm401_vm0, %v2079_v17  ;;  %v973_v17 = vld [vmem:[%s2490_s6 + $0xb8] sm:$0xff]  ;;  %v1795_v27 = vpack.c.bf16 %v997_v26, %v996_v25 }
 0x10d   : > { %838 = vmatprep.mubr.f32.mxu1 %v1928_v34  ;;  %927 = vmatprep.mubr.f32.mxu0 %v1928_v34  ;;  %v1745_v33 = vpack.c.bf16 %v973_v17, %v972_v16  ;;  %v1005_v34 = vld [vmem:[%s2490_s6 + $0x1b8] sm:$0xff] }
 0x10e   : > { %1744 = vmatpush3.bf16.msra.mxu1 %v1743_v30  ;;  %1776 = vmatpush3.bf16.msra.mxu0 %v1775_v31  ;;  %v1777_v36 = vpack.c.bf16 %v1005_v34, %v1004_v32  ;;  %v523_v32 = vsub.s32 0, %v522_v29  ;;  %v519_v34 = vld [vmem:[%s2488_s4] sm:$0xf] }
 0x10f   : > { %1746 = vmatprep.subr.bf16.mxu1 %v1745_v33  ;;  %v531_v33 = vsub.s32 2, %v522_v29 }
 0x110   : > { %1536 = vmatmul.mubr.msk.f32.gmra.mrb[14].mxu1 %vm401_vm0, %v2087_v18  ;;  %1540 = vmatmul.mubr.msk.f32.gmra.mrb[18].mxu0 %vm401_vm0, %v2087_v18  ;;  %v956_v18 = vld [vmem:[%s2490_s6 + $0x30] sm:$0xff] }
 0x111   : > { %v1747_v37 = vpack.c.bf16 %v957_v35, %v956_v18  ;;  %1778 = vmatprep.subr.bf16.mxu0 %v1777_v36  ;;  %v527_v18 = vsub.s32 1, %v522_v29  ;;  %v535_v35 = vsub.s32 3, %v522_v29  ;;  %v532_v41 = vrot.slane %v519_v34, %v531_v33 }
 0x112   : > { %1780 = vmatpush3.bf16.msra.mxu0 %v1779_v40  ;;  %v524_v40 = vrot.slane %v519_v34, %v523_v32 }
 0x113   : > { %1748 = vmatpush3.bf16.msra.mxu1 %v1747_v37  ;;  %1782 = vmatprep.subr.bf16.mxu0 %v1781_v48  ;;  %v528_v42 = vrot.slane %v519_v34, %v527_v18  ;;  %v536_v43 = vrot.slane %v519_v34, %v535_v35 }
 0x114   : > { %1750 = vmatprep.subr.bf16.mxu1 %v1749_v44 }
 0x116   : > { %1784 = vmatpush3.bf16.msra.mxu0 %v1783_v52 }
 0x117   : > { %1752 = vmatpush3.bf16.msra.mxu1 %v1751_v49  ;;  %1786 = vmatprep.subr.bf16.mxu0 %v1785_v60 }
 0x118   : > { %1754 = vmatprep.subr.bf16.mxu1 %v1753_v56 }
 0x11a   : > { %1788 = vmatpush3.bf16.msra.mxu0 %v1787_v0 }
 0x11b   : > { %1756 = vmatpush3.bf16.msra.mxu1 %v1755_v61  ;;  %1790 = vmatprep.subr.bf16.mxu0 %v1789_v8 }
 0x11c   : > { %1758 = vmatprep.subr.bf16.mxu1 %v1757_v4 }
 0x11e   : > { %1792 = vmatpush3.bf16.msra.mxu0 %v1791_v12 }
 0x11f   : > { %1760 = vmatpush3.bf16.msra.mxu1 %v1759_v9  ;;  %1794 = vmatprep.subr.bf16.mxu0 %v1793_v15 }
 0x120   : > { %1762 = vmatprep.subr.bf16.mxu1 %v1761_v20 }
 0x122   : > { %1796 = vmatpush3.bf16.msra.mxu0 %v1795_v27 }
 0x123   : > { %1764 = vmatpush3.bf16.msra.mxu1 %v1763_v24 }
 0x1c7   : > { %v620_v30 = vpop.f32.mrb[0].mxu1  ;;  %v709_v31 = vpop.f32.mrb[4].mxu0 }
 0x1c8   : > { %v622_v16 = vpop.f32.mrb[1].mxu1  ;;  %v711_v17 = vpop.f32.mrb[5].mxu0  ;;  %v621_v48 = vadd.f32 %v620_v30, %v524_v40  ;;  %v710_v49 = vadd.f32 %v709_v31, %v532_v41 }
 0x1c9   : > { %v623_v50 = vadd.f32 %v622_v16, %v528_v42  ;;  %v712_v51 = vadd.f32 %v711_v17, %v536_v43 }
 0x1ca   : > { %v732_v56 = vmax.f32 %v621_v48, 0.0  ;;  %v734_v57 = vmax.f32 %v710_v49, 0.0 }
 0x1cb   : > { %v626_v36 = vpop.f32.mrb[2].mxu1  ;;  %v715_v37 = vpop.f32.mrb[6].mxu0  ;;  %v733_v60 = vmax.f32 %v623_v50, 0.0  ;;  %v735_v61 = vmax.f32 %v712_v51, 0.0 }
 0x1cc   : > { %v628_v38 = vpop.f32.mrb[3].mxu1  ;;  %v717_v39 = vpop.f32.mrb[7].mxu0  ;;  %v627_v58 = vadd.f32 %v626_v36, %v524_v40  ;;  %v716_v59 = vadd.f32 %v715_v37, %v532_v41 }
 0x1cd   : > { %v629_v62 = vadd.f32 %v628_v38, %v528_v42  ;;  %v718_v63 = vadd.f32 %v717_v39, %v536_v43 }
 0x1ce   : > { %v736_v8 = vmax.f32 %v627_v58, 0.0  ;;  %v738_v9 = vmax.f32 %v716_v59, 0.0  ;;  %v1300_v58 = vld [vmem:[%s2493_s9] sm:$0xff]  ;;  %v1301_v59 = vld [vmem:[%s2493_s9 + $0x8] sm:$0xff] }
 0x1cf   : > { %v632_v44 = vpop.f32.mrb[4].mxu1  ;;  %v721_v45 = vpop.f32.mrb[8].mxu0  ;;  %v737_v12 = vmax.f32 %v629_v62, 0.0  ;;  %v739_v13 = vmax.f32 %v718_v63, 0.0 }
 0x1d0   : > { %v634_v46 = vpop.f32.mrb[5].mxu1  ;;  %v723_v47 = vpop.f32.mrb[9].mxu0  ;;  %v633_v10 = vadd.f32 %v632_v44, %v524_v40  ;;  %v722_v11 = vadd.f32 %v721_v45, %v532_v41 }
 0x1d1   : > { %v635_v14 = vadd.f32 %v634_v46, %v528_v42  ;;  %v724_v19 = vadd.f32 %v723_v47, %v536_v43 }
 0x1d2   : > { %v740_v27 = vmax.f32 %v633_v10, 0.0  ;;  %v742_v28 = vmax.f32 %v722_v11, 0.0 }
 0x1d3   : > { %v638_v52 = vpop.f32.mrb[6].mxu1  ;;  %v727_v53 = vpop.f32.mrb[10].mxu0  ;;  %v741_v31 = vmax.f32 %v635_v14, 0.0  ;;  %v743_v16 = vmax.f32 %v724_v19, 0.0 }
 0x1d4   : > { %v640_v54 = vpop.f32.mrb[7].mxu1  ;;  %v729_v55 = vpop.f32.mrb[11].mxu0  ;;  %v639_v29 = vadd.f32 %v638_v52, %v524_v40  ;;  %v728_v30 = vadd.f32 %v727_v53, %v532_v41  ;;  %v1188_v52 = vld [vmem:[%s2491_s7] sm:$0xff]  ;;  %v1189_v53 = vld [vmem:[%s2491_s7 + $0x8] sm:$0xff] }
 0x1d5   : > { %v641_v17 = vadd.f32 %v640_v54, %v528_v42  ;;  %v730_v32 = vadd.f32 %v729_v55, %v536_v43  ;;  %v1797_v54 = vpack.c.bf16 %v1189_v53, %v1188_v52  ;;  %v1190_v55 = vld [vmem:[%s2491_s7 + $0x10] sm:$0xff] }
 0x1d6   : > { %v744_v44 = vmax.f32 %v639_v29, 0.0  ;;  %v746_v45 = vmax.f32 %v728_v30, 0.0 }
 0x1d7   : > { %v822_v0 = vpop.f32.mrb[8].mxu1  ;;  %v911_v1 = vpop.f32.mrb[12].mxu0  ;;  %v745_v40 = vmax.f32 %v641_v17, 0.0  ;;  %v747_v41 = vmax.f32 %v730_v32, 0.0  ;;  %1798 = vmatprep.subr.bf16.mxu1 %v1797_v54  ;;  %v1303_v17 = vld [vmem:[%s2493_s9 + $0x18] sm:$0xff] }
 0x1d8   : > { %v934_v2 = vmul.f32 %v822_v0, %v732_v56  ;;  %v936_v3 = vmul.f32 %v911_v1, %v734_v57  ;;  %v824_v4 = vpop.f32.mrb[9].mxu1  ;;  %v913_v5 = vpop.f32.mrb[13].mxu0  ;;  %v1191_v56 = vld [vmem:[%s2491_s7 + $0x18] sm:$0xff] }
 0x1d9   : > { %v935_v6 = vmul.f32 %v824_v4, %v733_v60  ;;  %v937_v7 = vmul.f32 %v913_v5, %v735_v61  ;;  %v1801_v57 = vpack.c.bf16 %v1191_v56, %v1190_v55  ;;  %v1805_v60 = vpack.c.bf16 %v1301_v59, %v1300_v58 }
 0x1db   : > { %v828_v20 = vpop.f32.mrb[10].mxu1  ;;  %v917_v21 = vpop.f32.mrb[14].mxu0  ;;  %1078 = vmatprep.mubr.f32.mxu1 %v935_v6  ;;  %1163 = vmatprep.mubr.f32.mxu0 %v937_v7 }
 0x1dc   : > { %v938_v22 = vmul.f32 %v828_v20, %v736_v8  ;;  %v940_v23 = vmul.f32 %v917_v21, %v738_v9  ;;  %v830_v15 = vpop.f32.mrb[11].mxu1  ;;  %v919_v24 = vpop.f32.mrb[15].mxu0  ;;  %1079 = vmatmul.mubr.f32.vlgmr.msra.gmra.mrb[16].mxu1 %v934_v2  ;;  %1164 = vmatmul.mubr.f32.vlgmr.msra.gmra.mrb[20].mxu0 %v936_v3 }
 0x1dd   : > { %v939_v25 = vmul.f32 %v830_v15, %v737_v12  ;;  %v941_v26 = vmul.f32 %v919_v24, %v739_v13  ;;  %1800 = vmatpush3.bf16.msra.mxu1 %v1797_v54  ;;  %1806 = vmatprep.subr.bf16.mxu0 %v1805_v60 }
 0x1de   : > { %1802 = vmatprep.subr.bf16.mxu1 %v1801_v57  ;;  %1808 = vmatpush3.bf16.msra.mxu0 %v1805_v60 }
 0x1df   : > { %v834_v33 = vpop.f32.mrb[12].mxu1  ;;  %v923_v34 = vpop.f32.mrb[16].mxu0  ;;  %1083 = vmatprep.mubr.f32.mxu1 %v939_v25  ;;  %1168 = vmatprep.mubr.f32.mxu0 %v941_v26 }
 0x1e0   : > { %v942_v18 = vmul.f32 %v834_v33, %v740_v27  ;;  %v944_v35 = vmul.f32 %v923_v34, %v742_v28  ;;  %v836_v36 = vpop.f32.mrb[13].mxu1  ;;  %v925_v37 = vpop.f32.mrb[17].mxu0  ;;  %1084 = vmatmul.mubr.f32.gmra.mrb[18].mxu1 %v938_v22  ;;  %1169 = vmatmul.mubr.f32.gmra.mrb[22].mxu0 %v940_v23  ;;  %v1541_v33 = vld [vmem:[%s2492_s8] ss:$0 sm:$0xff] }
 0x1e1   : > { %v943_v38 = vmul.f32 %v836_v36, %v741_v31  ;;  %v945_v39 = vmul.f32 %v925_v37, %v743_v16  ;;  %1804 = vmatpush3.bf16.msra.mxu1 %v1801_v57  ;;  %v1302_v16 = vld [vmem:[%s2493_s9 + $0x10] sm:$0xff] }
 0x1e2   : > { %v1809_v32 = vpack.c.bf16 %v1303_v17, %v1302_v16 }
 0x1e3   : > { %v840_v46 = vpop.f32.mrb[14].mxu1  ;;  %v929_v47 = vpop.f32.mrb[18].mxu0  ;;  %1088 = vmatprep.mubr.f32.mxu1 %v943_v38  ;;  %1173 = vmatprep.mubr.f32.mxu0 %v945_v39 }
 0x1e4   : > { %v946_v42 = vmul.f32 %v840_v46, %v744_v44  ;;  %v948_v43 = vmul.f32 %v929_v47, %v746_v45  ;;  %v842_v48 = vpop.f32.mrb[15].mxu1  ;;  %v931_v49 = vpop.f32.mrb[19].mxu0  ;;  %1089 = vmatmul.mubr.f32.gmra.mrb[20].mxu1 %v942_v18  ;;  %1174 = vmatmul.mubr.f32.gmra.mrb[24].mxu0 %v944_v35  ;;  %v1546_v47 = vld [vmem:[%s2494_s10] ss:$0 sm:$0xff] }
 0x1e5   : > { %v947_v50 = vmul.f32 %v842_v48, %v745_v40  ;;  %v949_v51 = vmul.f32 %v931_v49, %v747_v41  ;;  %1810 = vmatprep.subr.bf16.mxu0 %v1809_v32 }
 0x1e6   : > { %1812 = vmatpush3.bf16.msra.mxu0 %v1809_v32 }
 0x1e7   : > { %1093 = vmatprep.mubr.f32.mxu1 %v947_v50  ;;  %1178 = vmatprep.mubr.f32.mxu0 %v949_v51 }
 0x1e8   : > { %1094 = vmatmul.mubr.f32.gmra.mrb[22].mxu1 %v946_v42  ;;  %1179 = vmatmul.mubr.f32.gmra.mrb[26].mxu0 %v948_v43 }
 0x2af   : > { %v1595_v61 = vpop.f32.mrb[16].mxu1  ;;  %v1639_v62 = vpop.f32.mrb[20].mxu0 }
 0x2b0   : > { %v1596_v63 = vpop.f32.mrb[17].mxu1  ;;  %v1640_v0 = vpop.f32.mrb[21].mxu0 }
 0x2b1   : > { %v1597_v1 = vadd.f32 %v1596_v63, %v1595_v61  ;;  %v1641_v2 = vadd.f32 %v1640_v0, %v1639_v62 }
 0x2b3   : > { %v1166_v3 = vadd.f32 %v1641_v2, %v1597_v1  ;;  %v1598_v4 = vpop.f32.mrb[18].mxu1  ;;  %v1642_v5 = vpop.f32.mrb[22].mxu0 }
 0x2b4   : > { %v1599_v6 = vpop.f32.mrb[19].mxu1  ;;  %v1643_v7 = vpop.f32.mrb[23].mxu0 }
 0x2b5   : > { %1856 = vtanh.f32 %v1166_v3  ;;  %v1600_v8 = vadd.f32 %v1599_v6, %v1598_v4  ;;  %v1644_v9 = vadd.f32 %v1643_v7, %v1642_v5 }
 0x2b7   : > { %v1171_v10 = vadd.f32 %v1644_v9, %v1600_v8  ;;  %v1601_v11 = vpop.f32.mrb[20].mxu1  ;;  %v1645_v12 = vpop.f32.mrb[24].mxu0 }
 0x2b8   : > { %v1602_v13 = vpop.f32.mrb[21].mxu1  ;;  %v1646_v14 = vpop.f32.mrb[25].mxu0 }
 0x2b9   : > { %1858 = vtanh.f32 %v1171_v10  ;;  %v1603_v19 = vadd.f32 %v1602_v13, %v1601_v11  ;;  %v1647_v20 = vadd.f32 %v1646_v14, %v1645_v12 }
 0x2bb   : > { %v1176_v21 = vadd.f32 %v1647_v20, %v1603_v19  ;;  %v1604_v22 = vpop.f32.mrb[22].mxu1  ;;  %v1648_v23 = vpop.f32.mrb[26].mxu0 }
 0x2bc   : > { %v1605_v15 = vpop.f32.mrb[23].mxu1  ;;  %v1649_v24 = vpop.f32.mrb[27].mxu0 }
 0x2bd   : > { %1860 = vtanh.f32 %v1176_v21  ;;  %v1606_v25 = vadd.f32 %v1605_v15, %v1604_v22  ;;  %v1650_v26 = vadd.f32 %v1649_v24, %v1648_v23 }
 0x2bf   : > { %v1857_v27 = vpop.eup %1856  ;;  %v1181_v28 = vadd.f32 %v1650_v26, %v1606_v25 }
 0x2c0   : > { %1685 = vmatprep.mubr.msk.f32.mxu1 %vm541_vm1, %v1857_v27  ;;  %1412 = vst.msk [vmem:[%s2399_s16] sm:$0xff] %vm541_vm1, %v1857_v27 }
 0x2c1   : > { %1862 = vtanh.f32 %v1181_v28 }
 0x2c3   : > { %v1859_v29 = vpop.eup %1858 }
 0x2c4   : > { %1686 = vmatmul.mubr.msk.f32.vlgmr.msra.gmra.mrb[24].mxu1 %vm541_vm1, %v1859_v29  ;;  %1413 = vst.msk [vmem:[%s2399_s16 + $0x8] sm:$0xff] %vm541_vm1, %v1859_v29 }
 0x2c7   : > { %v1861_v30 = vpop.eup %1860 }
 0x2c8   : > { %1688 = vmatprep.mubr.msk.f32.mxu1 %vm541_vm1, %v1861_v30  ;;  %1414 = vst.msk [vmem:[%s2399_s16 + $0x10] sm:$0xff] %vm541_vm1, %v1861_v30 }
 0x2cb   : > { %v1863_v31 = vpop.eup %1862 }
 0x2cc   : > { %1689 = vmatmul.mubr.msk.f32.gmra.mrb[26].mxu1 %vm541_vm1, %v1863_v31  ;;  %1415 = vst.msk [vmem:[%s2399_s16 + $0x18] sm:$0xff] %vm541_vm1, %v1863_v31 }
 0x397   : > { %v1687_v34 = vpop.f32.mrb[24].mxu1 }
 0x398   : > { %v1283_v18 = vadd.f32 %v1687_v34, %v1541_v33  ;;  %v1277_v35 = vpop.f32.mrb[25].mxu1 }
 0x399   : > { %v1278_v36 = vadd.f32 %v1541_v33, %v1277_v35 }
 0x39a   : > { %v1297_v38 = vmax.f32 %v1283_v18, 0.0 }
 0x39b   : > { %v1296_v37 = vmax.f32 %v1278_v36, 0.0 }
 0x39d   : > { %1699 = vmatprep.mubr.msk.f32.mxu0 %vm541_vm1, %v1296_v37 }
 0x39e   : > { %1700 = vmatmul.mubr.msk.f32.vlgmr.msra.gmra.mrb[28].mxu0 %vm541_vm1, %v1297_v38 }
 0x39f   : > { %v1690_v39 = vpop.f32.mrb[26].mxu1 }
 0x3a0   : > { %v1293_v44 = vadd.f32 %v1690_v39, %v1541_v33  ;;  %v1287_v45 = vpop.f32.mrb[27].mxu1 }
 0x3a1   : > { %v1288_v40 = vadd.f32 %v1541_v33, %v1287_v45 }
 0x3a2   : > { %v1299_v46 = vmax.f32 %v1293_v44, 0.0 }
 0x3a3   : > { %v1298_v41 = vmax.f32 %v1288_v40, 0.0 }
 0x3a5   : > { %1702 = vmatprep.mubr.msk.f32.mxu0 %vm541_vm1, %v1298_v41 }
 0x3a6   : > { %1703 = vmatmul.mubr.msk.f32.gmra.mrb[30].mxu0 %vm541_vm1, %v1299_v46 }
 0x471   : > { %v1701_v42 = vpop.f32.mrb[28].mxu0 }
 0x472   : > { %v1389_v43 = vpop.f32.mrb[29].mxu0  ;;  %v1395_v49 = vadd.f32 %v1701_v42, %v1546_v47 }
 0x473   : > { %v1390_v48 = vadd.f32 %v1546_v47, %v1389_v43 }
 0x474   : > { %v1409_v51 = vmax.f32 %v1395_v49, 0.0 }
 0x475   : > { %v1408_v50 = vmax.f32 %v1390_v48, 0.0 }
 0x477   : > { %1420 = vrot.lane.b32.xlu0 %v1408_v50, %s1929_s15 }
 0x479   : > { %v1704_v52 = vpop.f32.mrb[30].mxu0 }
 0x47a   : > { %v1399_v53 = vpop.f32.mrb[31].mxu0  ;;  %v1405_v55 = vadd.f32 %v1704_v52, %v1546_v47 }
 0x47b   : > { %v1400_v54 = vadd.f32 %v1546_v47, %v1399_v53  ;;  %1422 = vrot.lane.b32.xlu0 %v1409_v51, %s1929_s15 }
 0x47c   : > { %v1411_v57 = vmax.f32 %v1405_v55, 0.0 }
 0x47d   : > { %v1410_v56 = vmax.f32 %v1400_v54, 0.0 }
 0x47f   : > { %1424 = vrot.lane.b32.xlu1 %v1410_v56, %s1929_s15 }
 0x483   : > { %1426 = vrot.lane.b32.xlu1 %v1411_v57, %s1929_s15  ;;  %s1870_s15 = scalar_lea.vmem %s1869_s13, 1024 }
 0x484   : > { %p1872_p1 = scmp.lt.s32.totalorder %s1870_s15, %s1864_s12 }
 0x486   : > { %p1873_p2 = por %p1872_p1, %p1871_p0 }
 0x488   : > { %p1874_p3 = pnand %p1873_p2, %p1867_p13 }
 0x4e9   : > { %v1421_v58 = vpop.permute.xlu0 %1420 }
 0x4ea   : > { %1433 = vst.msk [vmem:[%s2399_s16] sm:$0xff] %vm1432_vm2, %v1421_v58 }
 0x4ed   : > { %v1423_v59 = vpop.permute.xlu0 %1422 }
 0x4ee   : > { %1434 = vst.msk [vmem:[%s2399_s16 + $0x8] sm:$0xff] %vm1432_vm2, %v1423_v59 }
 0x4f1   : > { %v1425_v60 = vpop.permute.xlu1 %1424 }
 0x4f2   : > { %1435 = vst.msk [vmem:[%s2399_s16 + $0x10] sm:$0xff] %vm1432_vm2, %v1425_v60 }
 0x4f5   : > { %v1427_v61 = vpop.permute.xlu1 %1426 }
 0x4f6   : > { %1436 = vst.msk [vmem:[%s2399_s16 + $0x18] sm:$0xff] %vm1432_vm2, %v1427_v61 }
 0x4f7   : > { %1877 = shalt.err (!%p1874_p3)
}
 0x4f8   : > { %s1878_s14 = scalar_lea.hbm %s2436_s29, 512  ;;  %s1882_s24 = scalar_lea.hbm %s2495_s11, 1024 }
 0x4f9   : > { %p1879_p4 = scmp.ne.s32.totalorder %s2436_s29, %s1878_s14  ;;  %p1883_p9 = scmp.lt.u32.totalorder %s2436_s29, %s2495_s11 }
 0x4fa   : > { %p1884_p10 = scmp.lt.u32.totalorder %s1882_s24, %s1878_s14  ;;  %p1886_p12 = scmp.lt.u32.totalorder %s1878_s14, %s2436_s29 }
 0x4fb   : > { %p1880_p7 = pnand %p1879_p4, %p2031_p5 }
 0x4fc   : > { %p1885_p11 = por %p1884_p10, %p1883_p9 }
 0x4fd   : > { %p1881_p8 = pneg %p1880_p7 }
 0x4fe   : > { %p1887_p13 = por %p1886_p12, %p1885_p11 }
 0x500   : > { %p1888_p0 = pnand %p1887_p13, %p1881_p8 }
 0x502   : > { %1891 = shalt.err (!%p1888_p0)
}
 0x503   : > { %s1931_s12 = smov 128   ;;  %s1932_s13 = smov 8  }
 0x504   : > { %1813 = dma.vmem_to_hbm [thread:$0]  (%p2031_p5), %s2438_s26, 512, %s2436_s29, %s2443_s30, %s1931_s12, %s1931_s12, %s1932_s13  }
 0x505 PF: > { %p1819_p1 = scmp.ge.s32.totalorder %s1926_s20, 2  ;;  %s1466_s15 = sand.u32 1, %s1914_s17  }
 0x506   : > { %s1467_s14 = scalar_lea.sflag [#allocation3], %s1466_s15 }
 0x507   : > { %p1816_p2 = pnand %p1819_p1, %p2035_p6 }
 0x509   : > { %1909 = dma.done.wait (!%p1816_p2), %s1467_s14, 512  }
 0x50a   : > { %1911 = vsyncadd (!%p1816_p2), %s1467_s14, 4294966784  ;;  %s2499_s16 = sld [smem:[#allocation5_spill]]  ;;  %p21_p3 = scmp.ge.s32.totalorder %s2018_s23, 4  }
 0x50b   : > { %s2500_s17 = smov %s1918_s18  ;;  %s2501_s18 = smov %s1922_s19 }
 0x50c   : > { %s2503_s20 = smov %s2018_s23  ;;  %23 = sbr.rel (!%p21_p3) target bundleno = 3 (0x3), region = 99 }
 0x510   : > { %s2502_s19 = smov %s2499_s16 }
 0x513   :  { %1472 = vsyncpa [#allocation3], 1 }
 0x514   :  { %1474 = vsyncpa [#allocation3 + $0x1], 1 }

</bundles_post_ra>
